<compile_context>
chip_gen: v7x
topology: tpu7x:2x2x1
jax: 0.10.0
libtpu: 0.0.40
codegen_flags: <defaults>
</compile_context>

<pallas_src>
import jax
import jax.numpy as jnp
from jax.experimental import pallas as pl
from jax.experimental.pallas import tpu as pltpu

B, S, H = 2, 8, 128          # batch, seq, per-layer hidden
D3 = 3 * H                   # cat of last 3 hidden states
A = 128                      # attention MLP hidden
VOCAB = 32


def head_kernel(x_ref, w1_ref, sp_ref, b3_ref, out_ref):
    """Whole batch in one invocation.

    x_ref : [B, S, D3]  cat of last-3 hidden states
    w1_ref: [D3, A]     attention Linear-1 weight (only MXU RHS)
    sp_ref: [4, D3]     packed small params:
                          row0 = b1  (first A cols, rest 0)
                          row1 = w2  (first A cols, rest 0)
                          row2 = w3[:D3]  (context part of final linear)
                          row3 = w3[D3:]  (cls     part of final linear)
    b3_ref: [1, 1]      final bias (SMEM scalar)
    out_ref:[B, 128]    lane-dense output slab (lane 0 holds the result)
    """
    Bb, Ss, Dd = x_ref.shape
    Aa = w1_ref.shape[-1]

    x = x_ref[...]                                                     # [B, S, D3]
    xf = x.reshape(Bb * Ss, Dd)                                        # free reshape

    # Single MXU pass: only the A-wide Linear-1 projection goes through the MXU.
    hpre = jnp.dot(xf, w1_ref[...],
                   preferred_element_type=jnp.float32)                 # [B*S, A]
    hpre = hpre.reshape(Bb, Ss, Aa)                                    # [B, S, A]

    sp = sp_ref[...]                                                   # [4, D3]
    b1 = sp[0:1, 0:Aa]                                                 # [1, A]
    w2 = sp[1:2, 0:Aa]                                                 # [1, A]
    w3c = sp[2:3, :]                                                   # [1, D3]
    w3s = sp[3:4, :]                                                   # [1, D3]

    # attention = Linear(D3->A) -> Tanh -> Linear(A->1) -> Softmax(dim=1)
    h = jnp.tanh(hpre + b1)                                            # [B, S, A]
    # logits via VPU mul + lane reduce (avoids an N=1 MXU matmul);
    # b2 dropped: softmax(x + const) == softmax(x).
    scores = jnp.sum(h * w2, axis=-1, keepdims=True)                   # [B, S, 1]
    m = jnp.max(scores, axis=1, keepdims=True)                         # [B, 1, 1]
    e = jnp.exp(scores - m)                                            # [B, S, 1]
    den = jnp.sum(e, axis=1)                                           # [B, 1]

    # linear(concat([context, cls], -1)) ==
    #   (sum_s w_s x_s)·w3c + x_0·w3s + b3,  with w_s = e_s / den folded in late:
    ctx_num = jnp.sum(e * x, axis=1)                                   # [B, D3] (VPU + sublane reduce)
    ctx = (jnp.sum(ctx_num * w3c, axis=-1, keepdims=True)              # [B, 1]  (lane reduce)
           * pl.reciprocal(den, approx=True))
    cls = jnp.sum(x[:, 0, :] * w3s, axis=-1, keepdims=True)            # [B, 1]
    res = ctx + cls + b3_ref[0, 0]                                     # [B, 1]

    # Lane-dense, unmasked store: broadcast each batch scalar across 128 lanes.
    out_ref[...] = jnp.broadcast_to(res, out_ref.shape).astype(out_ref.dtype)


def pack_small_params(b1, w2, w3):
    """Setup-time (NOT per-call) packing of all tiny parameters into one [4, D3] tile.

    b2 is intentionally omitted: it is a constant shift under the seq-softmax and
    therefore a mathematical no-op.
    """
    Aa = b1.shape[0]
    Dd = w3.shape[0] // 2
    pad = jnp.zeros((Dd - Aa,), b1.dtype)
    row_b1 = jnp.concatenate([b1, pad])
    row_w2 = jnp.concatenate([w2.reshape(Aa), pad])
    row_w3c = w3[:Dd, 0]
    row_w3s = w3[Dd:, 0]
    return jnp.stack([row_b1, row_w2, row_w3c, row_w3s], axis=0)       # [4, D3]


def attention_head(cat, w1, small_params, b3):
    """cat: [B, S, D3] f32, w1: [D3, A], small_params: [4, D3], b3: [1] -> [B, 1]."""
    Bb, Ss, Dd = cat.shape
    Aa = w1.shape[1]
    b3_2d = b3.reshape(1, 1)

    out_full = pl.pallas_call(
        head_kernel,
        out_shape=jax.ShapeDtypeStruct((Bb, 128), jnp.float32),
        grid_spec=pltpu.PrefetchScalarGridSpec(
            num_scalar_prefetch=0,
            grid=(1,),                                             # single invocation
            in_specs=[
                pl.BlockSpec((Bb, Ss, Dd), lambda i: (0, 0, 0)),   # full cat features
                pl.BlockSpec((Dd, Aa), lambda i: (0, 0)),          # W1 (only MXU RHS)
                pl.BlockSpec((4, Dd), lambda i: (0, 0)),           # packed small params
                pl.BlockSpec((1, 1), lambda i: (0, 0),
                             memory_space=pltpu.MemorySpace.SMEM),  # b3 scalar
            ],
            out_specs=pl.BlockSpec((Bb, 128), lambda i: (0, 0)),
        ),
        compiler_params=pltpu.CompilerParams(dimension_semantics=("arbitrary",)),
    )(cat, w1, small_params, b3_2d)
    return out_full[:, 0:1]                                        # [B, 1]


def synthetic_backbone_last3(input_ids, attention_mask, emb_tables):
    # TODO(synk): the pretrained Electra-large encoder has no Pallas equivalent here;
    # its last-3 hidden states are stand-ins built from deterministic embedding lookups
    # (kept in plain JAX; fusing this gather into the kernel only pays off at real sizes).
    mask = attention_mask.astype(jnp.float32)[:, :, None]
    hs = [jnp.take(tab, input_ids, axis=0) * mask for tab in emb_tables]
    # torch.cat((hidden_states[-1], hidden_states[-2], hidden_states[-3]), -1)
    return jnp.concatenate([hs[2], hs[1], hs[0]], axis=-1)


def ref_head(cat, w1, b1, w2, b2, w3, b3):
    h = jnp.tanh(cat @ w1 + b1)
    scores = h @ w2 + b2
    wts = jax.nn.softmax(scores, axis=1)
    context = jnp.sum(wts * cat, axis=1)
    cls = cat[:, 0]
    return jnp.concatenate([context, cls], -1) @ w3 + b3


if __name__ == "__main__":
    key = jax.random.PRNGKey(0)
    keys = jax.random.split(key, 10)

    # Deterministic parameters (shapes follow the scaled-down module).
    emb_tables = [jax.random.normal(keys[i], (VOCAB, H), jnp.float32) for i in range(3)]
    w1 = jax.random.normal(keys[3], (D3, A), jnp.float32) * 0.02
    b1 = jax.random.normal(keys[4], (A,), jnp.float32) * 0.02
    w2 = jax.random.normal(keys[5], (A, 1), jnp.float32) * 0.02
    b2 = jax.random.normal(keys[6], (1,), jnp.float32) * 0.02
    w3 = jax.random.normal(keys[7], (2 * D3, 1), jnp.float32) * 0.02
    b3 = jax.random.normal(keys[8], (1,), jnp.float32) * 0.02

    # Inputs: input_ids [B, S] int32, attention_mask [B, S] int32.
    input_ids = jax.random.randint(keys[9], (B, S), 0, VOCAB, dtype=jnp.int32)
    attention_mask = jnp.ones((B, S), dtype=jnp.int32)

    cat = synthetic_backbone_last3(input_ids, attention_mask, emb_tables)   # [B, S, D3]

    # Hoisted, one-time packing of tiny params (NOT part of the per-call path).
    small_params = jax.block_until_ready(pack_small_params(b1, w2, w3))     # [4, D3]

    out = attention_head(cat, w1, small_params, b3)                          # [B, 1]
    out = jax.block_until_ready(out)

    ref = ref_head(cat, w1, b1, w2, b2, w3, b3)
    assert out.shape == (B, 1)
    assert jnp.allclose(out, ref, rtol=1e-2, atol=1e-2)

    print("KERNEL_OK")
</pallas_src>

<mosaic_0001>
module attributes {stable_mosaic.version = 11 : i64} {
  func.func @head_kernel(%arg0: i32, %arg1: memref<2x8x384xf32, #tpu.memory_space<vmem>>, %arg2: memref<384x128xf32, #tpu.memory_space<vmem>>, %arg3: memref<4x384xf32, #tpu.memory_space<vmem>>, %arg4: memref<1x1xf32, #tpu.memory_space<smem>>, %arg5: memref<2x128xf32, #tpu.memory_space<vmem>>) attributes {dimension_semantics = [#tpu.dimension_semantics<arbitrary>], iteration_bounds = array<i64: 1>, scalar_prefetch = 0 : i64, scratch_operands = 0 : i64, tpu.core_type = #tpu.core_type<tc>, window_params = [{pipeline_mode = #tpu.pipeline_mode<synchronous>, transform_indices = @transform_0, window_bounds = array<i64: 2, 8, 384>}, {pipeline_mode = #tpu.pipeline_mode<synchronous>, transform_indices = @transform_1, window_bounds = array<i64: 384, 128>}, {pipeline_mode = #tpu.pipeline_mode<synchronous>, transform_indices = @transform_2, window_bounds = array<i64: 4, 384>}, {transform_indices = @transform_3, window_bounds = array<i64: 1, 1>}, {pipeline_mode = #tpu.pipeline_mode<synchronous>, transform_indices = @transform_4, window_bounds = array<i64: 2, 128>}]} {
    %c0 = arith.constant 0 : index
    %c0_0 = arith.constant 0 : index
    %c0_1 = arith.constant 0 : index
    %0 = vector.load %arg1[%c0, %c0_0, %c0_1] : memref<2x8x384xf32, #tpu.memory_space<vmem>>, vector<2x8x384xf32>
    %1 = vector.shape_cast %0 : vector<2x8x384xf32> to vector<16x384xf32>
    %c0_2 = arith.constant 0 : index
    %c0_3 = arith.constant 0 : index
    %2 = vector.load %arg2[%c0_2, %c0_3] : memref<384x128xf32, #tpu.memory_space<vmem>>, vector<384x128xf32>
    %cst = arith.constant dense<0.000000e+00> : vector<16x128xf32>
    %3 = tpu.matmul %1, %2, %cst {dimension_numbers = #tpu.dot_dimension_numbers<[1], [0], [0], [1], [0, 0, 1, 1], [], []>} : vector<16x384xf32>, vector<384x128xf32>, vector<16x128xf32> -> vector<16x128xf32>
    %4 = vector.shape_cast %3 : vector<16x128xf32> to vector<2x8x128xf32>
    %c0_4 = arith.constant 0 : index
    %c0_5 = arith.constant 0 : index
    %5 = vector.load %arg3[%c0_4, %c0_5] : memref<4x384xf32, #tpu.memory_space<vmem>>, vector<4x384xf32>
    %6 = vector.extract_strided_slice %5 {offsets = [0, 0], sizes = [1, 128], strides = [1, 1]} : vector<4x384xf32> to vector<1x128xf32>
    %7 = vector.extract_strided_slice %5 {offsets = [1, 0], sizes = [1, 128], strides = [1, 1]} : vector<4x384xf32> to vector<1x128xf32>
    %8 = vector.extract_strided_slice %5 {offsets = [2, 0], sizes = [1, 384], strides = [1, 1]} : vector<4x384xf32> to vector<1x384xf32>
    %9 = vector.extract_strided_slice %5 {offsets = [3, 0], sizes = [1, 384], strides = [1, 1]} : vector<4x384xf32> to vector<1x384xf32>
    %10 = vector.shape_cast %6 : vector<1x128xf32> to vector<1x1x128xf32>
    %11 = vector.broadcast %10 : vector<1x1x128xf32> to vector<2x8x128xf32>
    %12 = arith.addf %4, %11 : vector<2x8x128xf32>
    %13 = math.tanh %12 : vector<2x8x128xf32>
    %14 = vector.shape_cast %7 : vector<1x128xf32> to vector<1x1x128xf32>
    %15 = vector.broadcast %14 : vector<1x1x128xf32> to vector<2x8x128xf32>
    %16 = arith.mulf %13, %15 : vector<2x8x128xf32>
    %cst_6 = arith.constant dense<0.000000e+00> : vector<2x8xf32>
    %17 = vector.multi_reduction <add>, %16, %cst_6 [2] : vector<2x8x128xf32> to vector<2x8xf32>
    %18 = vector.shape_cast %17 : vector<2x8xf32> to vector<2x8x1xf32>
    %cst_7 = arith.constant dense<0xFF800000> : vector<2x1xf32>
    %19 = vector.multi_reduction <maximumf>, %18, %cst_7 [1] : vector<2x8x1xf32> to vector<2x1xf32>
    %20 = vector.shape_cast %19 : vector<2x1xf32> to vector<2x1x1xf32>
    %21 = vector.broadcast %20 : vector<2x1x1xf32> to vector<2x8x1xf32>
    %22 = arith.subf %18, %21 : vector<2x8x1xf32>
    %23 = math.exp %22 : vector<2x8x1xf32>
    %cst_8 = arith.constant dense<0.000000e+00> : vector<2x1xf32>
    %24 = vector.multi_reduction <add>, %23, %cst_8 [1] : vector<2x8x1xf32> to vector<2x1xf32>
    %25 = vector.broadcast %23 : vector<2x8x1xf32> to vector<2x8x384xf32>
    %26 = arith.mulf %25, %0 : vector<2x8x384xf32>
    %cst_9 = arith.constant dense<0.000000e+00> : vector<2x384xf32>
    %27 = vector.multi_reduction <add>, %26, %cst_9 [1] : vector<2x8x384xf32> to vector<2x384xf32>
    %28 = vector.broadcast %8 : vector<1x384xf32> to vector<2x384xf32>
    %29 = arith.mulf %27, %28 : vector<2x384xf32>
    %cst_10 = arith.constant dense<0.000000e+00> : vector<2xf32>
    %30 = vector.multi_reduction <add>, %29, %cst_10 [1] : vector<2x384xf32> to vector<2xf32>
    %31 = vector.shape_cast %30 : vector<2xf32> to vector<2x1xf32>
    %32 = tpu.reciprocal %24 {approx = true} : vector<2x1xf32> -> vector<2x1xf32>
    %33 = arith.mulf %31, %32 : vector<2x1xf32>
    %34 = vector.extract_strided_slice %0 {offsets = [0, 0, 0], sizes = [2, 1, 384], strides = [1, 1, 1]} : vector<2x8x384xf32> to vector<2x1x384xf32>
    %35 = vector.shape_cast %34 : vector<2x1x384xf32> to vector<2x384xf32>
    %36 = vector.broadcast %9 : vector<1x384xf32> to vector<2x384xf32>
    %37 = arith.mulf %35, %36 : vector<2x384xf32>
    %cst_11 = arith.constant dense<0.000000e+00> : vector<2xf32>
    %38 = vector.multi_reduction <add>, %37, %cst_11 [1] : vector<2x384xf32> to vector<2xf32>
    %39 = vector.shape_cast %38 : vector<2xf32> to vector<2x1xf32>
    %40 = arith.addf %33, %39 : vector<2x1xf32>
    %c0_12 = arith.constant 0 : index
    %c0_13 = arith.constant 0 : index
    %41 = memref.load %arg4[%c0_12, %c0_13] : memref<1x1xf32, #tpu.memory_space<smem>>
    %42 = vector.broadcast %41 : f32 to vector<2x1xf32>
    %43 = arith.addf %40, %42 : vector<2x1xf32>
    %44 = vector.shape_cast %43 : vector<2x1xf32> to vector<2x1xf32>
    %45 = vector.broadcast %44 : vector<2x1xf32> to vector<2x128xf32>
    %c0_14 = arith.constant 0 : index
    %c0_15 = arith.constant 0 : index
    %46 = vector.load %arg5[%c0_14, %c0_15] : memref<2x128xf32, #tpu.memory_space<vmem>>, vector<2x128xf32>
    tpu.vector_store %arg5[%c0_14, %c0_15], %45 {strides = array<i32>} : memref<2x128xf32, #tpu.memory_space<vmem>>, vector<2x128xf32>,
    return
  }
  func.func @transform_0(%arg0: i32) -> (i32, i32, i32) {
    %c0_i32 = arith.constant 0 : i32
    %c0_i32_0 = arith.constant 0 : i32
    %c0_i32_1 = arith.constant 0 : i32
    %c0_i32_2 = arith.constant 0 : i32
    return %c0_i32, %c0_i32_0, %c0_i32_1 : i32, i32, i32
  }
  func.func @transform_1(%arg0: i32) -> (i32, i32) {
    %c0_i32 = arith.constant 0 : i32
    %c0_i32_0 = arith.constant 0 : i32
    %c0_i32_1 = arith.constant 0 : i32
    return %c0_i32, %c0_i32_0 : i32, i32
  }
  func.func @transform_2(%arg0: i32) -> (i32, i32) {
    %c0_i32 = arith.constant 0 : i32
    %c0_i32_0 = arith.constant 0 : i32
    %c0_i32_1 = arith.constant 0 : i32
    return %c0_i32, %c0_i32_0 : i32, i32
  }
  func.func @transform_3(%arg0: i32) -> (i32, i32) {
    %c0_i32 = arith.constant 0 : i32
    %c0_i32_0 = arith.constant 0 : i32
    %c0_i32_1 = arith.constant 0 : i32
    return %c0_i32, %c0_i32_0 : i32, i32
  }
  func.func @transform_4(%arg0: i32) -> (i32, i32) {
    %c0_i32 = arith.constant 0 : i32
    %c0_i32_0 = arith.constant 0 : i32
    %c0_i32_1 = arith.constant 0 : i32
    return %c0_i32, %c0_i32_0 : i32, i32
  }
}

</mosaic_0001>

<bundles_post_ra>
// kernel: tpu_custom_call.1
= control target key start
LH: loop header
LB: loop body
LE: loop exit
PB: predicated region body
PF: predicated region fallthrough
CT: control target
= control target key end

     0   :  { %10 = vsyncpa [#allocation4], 0  ;;  %s930_s0 = inlined_call_operand.hbm [shape: f32[2,8,384], index: 0, kind: input, shape index: {}]   ;;  %s931_s1 = inlined_call_operand.hbm [shape: f32[384,128], index: 1, kind: input, shape index: {}]   ;;  %s932_s2 = inlined_call_operand.hbm [shape: f32[4,384], index: 2, kind: input, shape index: {}]   ;;  %s933_s3 = inlined_call_operand.<no memory space> [shape: f32[1,1], index: 3, kind: input, shape index: {}]   ;;  %s934_s4 = inlined_call_operand.hbm [shape: f32[2,128], index: 4, kind: output, shape index: {}]  }
   0x1   :  { %11 = vsyncpa [#allocation7], 0 }
   0x2   :  { %12 = vsyncpa [#allocation5], 0  ;;  %s772_s15 = smov [#allocation6]   ;;  %s678_s19 = scalar_lea.hbm %s931_s1, 6144 }
   0x3   :  { %s30_s16 = sshll.u32 %s772_s15, 4  ;;  %p679_p0 = scmp.ne.s32.totalorder %s931_s1, %s678_s19  ;;  %s31_s16 = int_to_ptr.vmem [resolvable:$true] %s30_s16 }
   0x4   :  { %p682_p1 = scmp.lt.u32.totalorder %s678_s19, %s931_s1 }
   0x6   :  { %p684_p2 = pnand %p682_p1, %p679_p0 }
   0x8   :  { %687 = shalt.err (!%p684_p2)
}
   0x9   :  { %s688_s24 = scalar_lea.vmem %s31_s16, 6144  ;;  %p693_p4 = scmp.lt.s32.totalorder %s31_s16, %s31_s16 }
   0xa   :  { %p689_p3 = scmp.ne.s32.totalorder %s31_s16, %s688_s24  ;;  %p694_p5 = scmp.lt.s32.totalorder %s688_s24, %s688_s24 }
   0xc   :  { %p695_p6 = por %p694_p5, %p693_p4 }
   0xe   :  { %p696_p7 = pnand %p695_p6, %p689_p3 }
  0x10   :  { %699 = shalt.err (!%p696_p7)
}
  0x11   :  { %s773_s25 = smov 128   ;;  %s774_s26 = smov 8  }
  0x12   :  { %36 = dma.hbm_to_vmem [thread:$0]  %s931_s1, 6144, %s31_s16, [#allocation7], %s773_s25, %s773_s25, %s774_s26  }
  0x13   :  { %s775_s29 = smov [#allocation3]   ;;  %s700_s7 = scalar_lea.hbm %s930_s0, 768 }
  0x14   :  { %s18_s30 = sshll.u32 %s775_s29, 4  ;;  %p701_p8 = scmp.ne.s32.totalorder %s930_s0, %s700_s7  ;;  %s19_s30 = int_to_ptr.vmem [resolvable:$true] %s18_s30 }
  0x15   :  { %p704_p9 = scmp.lt.u32.totalorder %s700_s7, %s930_s0 }
  0x17   :  { %p706_p10 = pnand %p704_p9, %p701_p8 }
  0x19   :  { %709 = shalt.err (!%p706_p10)
}
  0x1a   :  { %s710_s12 = scalar_lea.vmem %s19_s30, 768  ;;  %p715_p12 = scmp.lt.s32.totalorder %s19_s30, %s19_s30 }
  0x1b   :  { %p711_p11 = scmp.ne.s32.totalorder %s19_s30, %s710_s12  ;;  %p716_p13 = scmp.lt.s32.totalorder %s710_s12, %s710_s12 }
  0x1d   :  { %p717_p0 = por %p716_p13, %p715_p12 }
  0x1f   :  { %p718_p1 = pnand %p717_p0, %p711_p11 }
  0x21   :  { %721 = shalt.err (!%p718_p1)
}
  0x22   :  { %s776_s1 = smov 384   ;;  %s777_s13 = smov 24  }
  0x23   :  { %24 = dma.hbm_to_vmem [thread:$0]  %s930_s0, 768, %s19_s30, [#allocation4], %s776_s1, %s776_s1, %s777_s13  }
  0x24   :  { %s778_s16 = smov [#allocation8]   ;;  %s722_s20 = scalar_lea.hbm %s932_s2, 192 }
  0x25   :  { %s43_s17 = sshll.u32 %s778_s16, 4  ;;  %p723_p2 = scmp.ne.s32.totalorder %s932_s2, %s722_s20  ;;  %s44_s17 = int_to_ptr.vmem [resolvable:$true] %s43_s17 }
  0x26   :  { %p726_p3 = scmp.lt.u32.totalorder %s722_s20, %s932_s2 }
  0x28   :  { %p728_p4 = pnand %p726_p3, %p723_p2 }
  0x2a   :  { %731 = shalt.err (!%p728_p4)
}
  0x2b   :  { %s732_s25 = scalar_lea.vmem %s44_s17, 192  ;;  %p737_p6 = scmp.lt.s32.totalorder %s44_s17, %s44_s17 }
  0x2c   :  { %p733_p5 = scmp.ne.s32.totalorder %s44_s17, %s732_s25  ;;  %p738_p7 = scmp.lt.s32.totalorder %s732_s25, %s732_s25 }
  0x2e   :  { %p739_p8 = por %p738_p7, %p737_p6 }
  0x30   :  { %p740_p9 = pnand %p739_p8, %p733_p5 }
  0x32   :  { %743 = shalt.err (!%p740_p9)
}
  0x33   :  { %46 = dma.hbm_to_vmem [thread:$0]  %s932_s2, 192, %s44_s17, [#allocation7]  }
  0x34   :  { %766 = dma.done.wait [#allocation4], 768  }
  0x35   :  { %767 = vsyncadd [#allocation4], 4294966528 }
  0x36   :  { %768 = dma.done.wait [#allocation7], 6336  }
  0x37   :  { %769 = vsyncadd [#allocation7], 4294960960  ;;  %v80_v0 = vld [vmem:[#allocation6 + $0x80] sm:$0xff]  ;;  %v81_v1 = vld [vmem:[#allocation6 + $0x88] sm:$0xff]  ;;  %vm396_vm0 = vcmask 1041409   ;;  %vm405_vm1 = vcmask 1041408  }
  0x38   :  { %v64_v2 = vld [vmem:[#allocation6] sm:$0xff]  ;;  %v592_v3 = vpack.c.bf16 %v81_v1, %v80_v0  ;;  %v65_v4 = vld [vmem:[#allocation6 + $0x8] sm:$0xff]  ;;  %v82_v9 = vld [vmem:[#allocation6 + $0x90] sm:$0xff]  ;;  %s780_s28 = smov [#allocation9]  }
  0x39   :  { %v96_v5 = vld [vmem:[#allocation6 + $0x100] sm:$0xff]  ;;  %v97_v6 = vld [vmem:[#allocation6 + $0x108] sm:$0xff]  ;;  %v594_v7 = vpack.c.bf16 %v65_v4, %v64_v2  ;;  %v83_v10 = vld [vmem:[#allocation6 + $0x98] sm:$0xff]  ;;  %s491_s29 = sshll.u32 %s780_s28, 4  ;;  %s492_s29 = int_to_ptr.vmem [resolvable:$true] %s491_s29 }
  0x3a   :  { %v624_v8 = vpack.c.bf16 %v97_v6, %v96_v5  ;;  %v66_v11 = vld [vmem:[#allocation6 + $0x10] sm:$0xff]  ;;  %593 = vmatprep.subr.bf16.mxu0 %v592_v3  ;;  %v596_v12 = vpack.c.bf16 %v83_v10, %v82_v9  ;;  %v67_v13 = vld [vmem:[#allocation6 + $0x18] sm:$0xff]  ;;  %v84_v18 = vld [vmem:[#allocation6 + $0xa0] sm:$0xff]  ;;  %s744_s30 = scalar_lea.vmem %s492_s29, 32  ;;  %p749_p11 = scmp.lt.s32.totalorder %s492_s29, %s492_s29 }
  0x3b   :  { %v98_v14 = vld [vmem:[#allocation6 + $0x110] sm:$0xff]  ;;  %v99_v15 = vld [vmem:[#allocation6 + $0x118] sm:$0xff]  ;;  %595 = vmatpush3.bf16.msra.mxu0 %v594_v7  ;;  %v598_v16 = vpack.c.bf16 %v67_v13, %v66_v11  ;;  %v85_v19 = vld [vmem:[#allocation6 + $0xa8] sm:$0xff]  ;;  %p745_p10 = scmp.ne.s32.totalorder %s492_s29, %s744_s30  ;;  %p750_p12 = scmp.lt.s32.totalorder %s744_s30, %s744_s30 }
  0x3c   :  { %625 = vmatprep.subr.bf16.mxu1 %v624_v8  ;;  %v628_v17 = vpack.c.bf16 %v99_v15, %v98_v14  ;;  %v68_v20 = vld [vmem:[#allocation6 + $0x20] sm:$0xff]  ;;  %597 = vmatprep.subr.bf16.mxu0 %v596_v12  ;;  %v600_v21 = vpack.c.bf16 %v85_v19, %v84_v18  ;;  %v69_v22 = vld [vmem:[#allocation6 + $0x28] sm:$0xff]  ;;  %v86_v26 = vld [vmem:[#allocation6 + $0xb0] sm:$0xff]  ;;  %v264_v14 = vlaneseq }
  0x3d   :  { %627 = vmatpush3.bf16.msra.mxu1 %v624_v8  ;;  %v100_v23 = vld [vmem:[#allocation6 + $0x120] sm:$0xff]  ;;  %v101_v24 = vld [vmem:[#allocation6 + $0x128] sm:$0xff]  ;;  %v87_v27 = vld [vmem:[#allocation6 + $0xb8] sm:$0xff]  ;;  %v602_v30 = vpack.c.bf16 %v69_v22, %v68_v20  ;;  %p751_p13 = por %p750_p12, %p749_p11 }
  0x3e   :  { %629 = vmatprep.subr.bf16.mxu1 %v628_v17  ;;  %v632_v25 = vpack.c.bf16 %v101_v24, %v100_v23  ;;  %v102_v28 = vld [vmem:[#allocation6 + $0x130] sm:$0xff]  ;;  %v103_v29 = vld [vmem:[#allocation6 + $0x138] sm:$0xff]  ;;  %v604_v31 = vpack.c.bf16 %v87_v27, %v86_v26  ;;  %v88_v35 = vld [vmem:[#allocation6 + $0xc0] sm:$0xff]  ;;  %v860_v15 = vshrl.u32 %v264_v14, 7 }
  0x3f   :  { %599 = vmatpush3.bf16.msra.mxu0 %v598_v16  ;;  %v70_v32 = vld [vmem:[#allocation6 + $0x30] sm:$0xff]  ;;  %v71_v33 = vld [vmem:[#allocation6 + $0x38] sm:$0xff]  ;;  %v636_v34 = vpack.c.bf16 %v103_v29, %v102_v28  ;;  %v89_v36 = vld [vmem:[#allocation6 + $0xc8] sm:$0xff]  ;;  %p752_p0 = pnand %p751_p13, %p745_p10 }
  0x40   :  { %601 = vmatprep.subr.bf16.mxu0 %v600_v21  ;;  %v104_v37 = vld [vmem:[#allocation6 + $0x140] sm:$0xff]  ;;  %v105_v38 = vld [vmem:[#allocation6 + $0x148] sm:$0xff]  ;;  %v606_v39 = vpack.c.bf16 %v71_v33, %v70_v32  ;;  %v608_v40 = vpack.c.bf16 %v89_v36, %v88_v35  ;;  %v90_v44 = vld [vmem:[#allocation6 + $0xd0] sm:$0xff]  ;;  %v266_v21 = vsub.s32 0, %v860_v15 }
  0x41   :  { %631 = vmatpush3.bf16.msra.mxu1 %v628_v17  ;;  %v72_v41 = vld [vmem:[#allocation6 + $0x40] sm:$0xff]  ;;  %v73_v42 = vld [vmem:[#allocation6 + $0x48] sm:$0xff]  ;;  %v640_v43 = vpack.c.bf16 %v105_v38, %v104_v37  ;;  %v91_v45 = vld [vmem:[#allocation6 + $0xd8] sm:$0xff] }
  0x42   :  { %633 = vmatprep.subr.bf16.mxu1 %v632_v25  ;;  %v106_v46 = vld [vmem:[#allocation6 + $0x150] sm:$0xff]  ;;  %v107_v47 = vld [vmem:[#allocation6 + $0x158] sm:$0xff]  ;;  %v610_v48 = vpack.c.bf16 %v73_v42, %v72_v41  ;;  %v612_v50 = vpack.c.bf16 %v91_v45, %v90_v44  ;;  %v844_v53 = vld [vmem:[#allocation3 + $0x10] sm:$0xff] }
  0x43   :  { %603 = vmatpush3.bf16.msra.mxu0 %v602_v30  ;;  %v842_v49 = vld [vmem:[#allocation3 + $0x8] sm:$0xff]  ;;  %v74_v51 = vld [vmem:[#allocation6 + $0x50] sm:$0xff]  ;;  %v644_v54 = vpack.c.bf16 %v107_v47, %v106_v46  ;;  %v92_v55 = vld [vmem:[#allocation6 + $0xe0] sm:$0xff]  ;;  %589 = vmatprep.mubr.f32.mxu1 %v844_v53 }
  0x44   :  { %605 = vmatprep.subr.bf16.mxu0 %v604_v31  ;;  %v75_v52 = vld [vmem:[#allocation6 + $0x58] sm:$0xff]  ;;  %v93_v56 = vld [vmem:[#allocation6 + $0xe8] sm:$0xff]  ;;  %176 = vmatprep.mubr.f32.mxu0 %v842_v49  ;;  %v108_v57 = vld [vmem:[#allocation6 + $0x160] sm:$0xff]  ;;  %v274_v31 = vsub.s32 1, %v860_v15 }
  0x45   :  { %635 = vmatpush3.bf16.msra.mxu1 %v632_v25  ;;  %v109_v58 = vld [vmem:[#allocation6 + $0x168] sm:$0xff]  ;;  %v614_v59 = vpack.c.bf16 %v75_v52, %v74_v51  ;;  %v616_v60 = vpack.c.bf16 %v93_v56, %v92_v55  ;;  %v76_v61 = vld [vmem:[#allocation6 + $0x60] sm:$0xff]  ;;  %v94_v0 = vld [vmem:[#allocation6 + $0xf0] sm:$0xff] }
  0x46   :  { %637 = vmatprep.subr.bf16.mxu1 %v636_v34  ;;  %v77_v62 = vld [vmem:[#allocation6 + $0x68] sm:$0xff]  ;;  %v648_v63 = vpack.c.bf16 %v109_v58, %v108_v57  ;;  %v95_v1 = vld [vmem:[#allocation6 + $0xf8] sm:$0xff]  ;;  %v110_v2 = vld [vmem:[#allocation6 + $0x170] sm:$0xff] }
  0x47   :  { %607 = vmatpush3.bf16.msra.mxu0 %v606_v39  ;;  %v111_v3 = vld [vmem:[#allocation6 + $0x178] sm:$0xff]  ;;  %v618_v4 = vpack.c.bf16 %v77_v62, %v76_v61  ;;  %v620_v5 = vpack.c.bf16 %v95_v1, %v94_v0  ;;  %v78_v6 = vld [vmem:[#allocation6 + $0x70] sm:$0xff]  ;;  %v857_v13 = vld [vmem:[#allocation3 + $0x18] sm:$0xff]  ;;  %v358_v1 = vsub.s32 2, %v860_v15 }
  0x48   :  { %609 = vmatprep.subr.bf16.mxu0 %v608_v40  ;;  %v79_v7 = vld [vmem:[#allocation6 + $0x78] sm:$0xff]  ;;  %v652_v8 = vpack.c.bf16 %v111_v3, %v110_v2  ;;  %v848_v10 = vld [vmem:[#allocation3] sm:$0xff]  ;;  %v863_v22 = vld [vmem:[#allocation8] sm:$0xff]  ;;  %v362_v3 = vsub.s32 6, %v860_v15 }
  0x49   :  { %639 = vmatpush3.bf16.msra.mxu1 %v636_v34  ;;  %v622_v9 = vpack.c.bf16 %v79_v7, %v78_v6  ;;  %v850_v11 = vld [vmem:[#allocation3 + $0x28] sm:$0xff]  ;;  %v852_v12 = vld [vmem:[#allocation3 + $0x20] sm:$0xff]  ;;  %v267_v26 = vrot.slane %v863_v22, %v266_v21  ;;  %v275_v32 = vrot.slane %v863_v22, %v274_v31  ;;  %v263_v57 = vld [vmem:[#allocation8 + $0x8] sm:$0xf]  ;;  %v359_v14 = vrot.slane %v863_v22, %v358_v1 }
  0x4a   :  { %641 = vmatprep.subr.bf16.mxu1 %v640_v43  ;;  %v367_v6 = vrot.slane %v263_v57, %v358_v1 }
  0x4b   :  { %611 = vmatpush3.bf16.msra.mxu0 %v610_v48 }
  0x4c   :  { %613 = vmatprep.subr.bf16.mxu0 %v612_v50  ;;  %v426_v50 = vsub.s32 7, %v860_v15 }
  0x4d   :  { %643 = vmatpush3.bf16.msra.mxu1 %v640_v43 }
  0x4e   :  { %645 = vmatprep.subr.bf16.mxu1 %v644_v54  ;;  %v427_v58 = vrot.slane %v863_v22, %v426_v50 }
  0x4f   :  { %615 = vmatpush3.bf16.msra.mxu0 %v614_v59 }
  0x50   :  { %617 = vmatprep.subr.bf16.mxu0 %v616_v60 }
  0x51   :  { %647 = vmatpush3.bf16.msra.mxu1 %v644_v54  ;;  %v422_v54 = vsub.s32 3, %v860_v15 }
  0x52   :  { %649 = vmatprep.subr.bf16.mxu1 %v648_v63 }
  0x53   :  { %619 = vmatpush3.bf16.msra.mxu0 %v618_v4  ;;  %v431_v59 = vrot.slane %v263_v57, %v422_v54  ;;  %v423_v61 = vrot.slane %v863_v22, %v422_v54 }
  0x54   :  { %621 = vmatprep.subr.bf16.mxu0 %v620_v5 }
  0x55   :  { %651 = vmatpush3.bf16.msra.mxu1 %v648_v63  ;;  %v442_v63 = vrot.slane %v427_v58, %v422_v54  ;;  %v446_v0 = vrot.slane %v431_v59, %v422_v54  ;;  %v438_v2 = vrot.slane %v423_v61, %v422_v54 }
  0x56   :  { %653 = vmatprep.subr.bf16.mxu1 %v652_v8 }
  0x57   :  { %623 = vmatpush3.bf16.msra.mxu0 %v622_v9  ;;  %v875_v4 = vmul.f32 %v446_v0, %v850_v11  ;;  %v878_v5 = vmul.f32 %v442_v63, %v852_v12  ;;  %v450_v9 = vmul.f32 %v438_v2, %v857_v13  ;;  %v891_v21 = vmul.f32 %v446_v0, %v844_v53 }
  0x59   :  { %655 = vmatpush3.bf16.msra.mxu1 %v652_v8  ;;  %v881_v8 = vmul.f32 %v442_v63, %v842_v49 }
  0x5a   :  { %177 = vmatmul.mubr.f32.vlgmr.msra.gmra.mrb[0].mxu0 %v848_v10 }
  0x5b   :  { %181 = vmatprep.mubr.f32.mxu0 %v852_v12 }
  0x5c   :  { %590 = vmatmul.mubr.f32.vlgmr.msra.gmra.mrb[0].mxu1 %v850_v11 }
  0x5e   :  { %182 = vmatmul.mubr.f32.gmra.mrb[2].mxu0 %v857_v13 }
 0x12d   :  { %v533_v16 = vpop.f32.mrb[0].mxu0 }
 0x12e   :  { %v534_v17 = vpop.f32.mrb[1].mxu0 }
 0x12f   :  { %v591_v18 = vpop.f32.mrb[0].mxu1  ;;  %v535_v19 = vadd.f32 %v534_v17, %v533_v16  ;;  %v363_v16 = vrot.slane %v863_v22, %v362_v3 }
 0x130   :  { %v253_v20 = vpop.f32.mrb[1].mxu1 }
 0x131   :  { %v254_v23 = vadd.f32 %v535_v19, %v253_v20  ;;  %v536_v24 = vpop.f32.mrb[2].mxu0  ;;  %v447_v20 = vmul.f32 %v438_v2, %v848_v10 }
 0x132   :  { %v537_v25 = vpop.f32.mrb[3].mxu0 }
 0x133   :  { %v538_v27 = vadd.f32 %v537_v25, %v536_v24  ;;  %v268_v29 = vadd.f32 %v267_v26, %v254_v23  ;;  %v463_v23 = vrot.slane %v875_v4, 7  ;;  %v461_v24 = vrot.slane %v878_v5, 7 }
 0x134   :  { %v779_v4 = vmov 0  }
 0x135   :  { %v259_v28 = vadd.f32 %v591_v18, %v538_v27  ;;  %665 = vset.pattern.permute.xlu0 %v779_v4 }
 0x137   :  { %v269_v30 = vadd.f32 %v267_v26, %v259_v28 }
 0x139   :  { %666 = vtanh.f32 %v269_v30  ;;  %v382_v30 = vrot.slane %v367_v6, %v358_v1 }
 0x13a   :  { %668 = vtanh.f32 %v268_v29  ;;  %v374_v29 = vrot.slane %v359_v14, %v358_v1 }
 0x143   :  { %v667_v33 = vpop.eup %666 }
 0x144   :  { %v277_v34 = vmul.f32 %v667_v33, %v275_v32  ;;  %v669_v35 = vpop.eup %668 }
 0x145   :  { %v276_v36 = vmul.f32 %v669_v35, %v275_v32 }
 0x146   :  { %280 = vadd.xlane.f32.xlu0 %v277_v34 }
 0x14a   :  { %278 = vadd.xlane.f32.xlu0 %v276_v36 }
 0x1d3   :  { %v281_v37 = vpop.xlane.xlu0 %280 }
 0x1d4   :  { %v288_v38 = vrot.slane %v281_v37, 4 }
 0x1d6   :  { %v289_v39 = vmax.f32 %v281_v37, %v288_v38 }
 0x1d7   :  { %v279_v40 = vpop.xlane.xlu0 %278 }
 0x1d8   :  { %v290_v41 = vrot.slane %v289_v39, 2  ;;  %v282_v42 = vrot.slane %v279_v40, 4 }
 0x1da   :  { %v291_v43 = vmax.f32 %v289_v39, %v290_v41  ;;  %v283_v44 = vmax.f32 %v279_v40, %v282_v42 }
 0x1dc   :  { %v292_v45 = vrot.slane %v291_v43, 1  ;;  %v284_v46 = vrot.slane %v283_v44, 2 }
 0x1de   :  { %v293_v47 = vmax.f32 %v291_v43, %v292_v45  ;;  %v285_v48 = vmax.f32 %v283_v44, %v284_v46 }
 0x1e0   :  { %v295_v51 = vsub.f32 %v281_v37, %v293_v47  ;;  %v286_v52 = vrot.slane %v285_v48, 1 }
 0x1e2   :  { %v298_v55 = vmul.f32 1.442695, %v295_v51  ;;  %v287_v56 = vmax.f32 %v285_v48, %v286_v52 }
 0x1e4   :  { %670 = vpow2.f32 %v298_v55  ;;  %v294_v60 = vsub.f32 %v279_v40, %v287_v56 }
 0x1e6   :  { %v296_v62 = vmul.f32 1.442695, %v294_v60 }
 0x1e8   :  { %672 = vpow2.f32 %v296_v62 }
 0x1ee   :  { %v671_v7 = vpop.eup %670 }
 0x1ef   :  { %v315_v17 = vmul.f32 %v671_v7, %v857_v13  ;;  %v316_v15 = vmul.f32 %v671_v7, %v852_v12  ;;  %v317_v18 = vmul.f32 %v671_v7, %v850_v11  ;;  %v306_v19 = vrot.slane %v671_v7, 4 }
 0x1f0   :  { %v459_v13 = vrot.slane %v450_v9, 7  ;;  %v378_v12 = vrot.slane %v363_v16, %v358_v1 }
 0x1f1   :  { %v336_v25 = vrot.slane %v315_v17, 4  ;;  %v342_v26 = vrot.slane %v316_v15, 4  ;;  %v348_v27 = vrot.slane %v317_v18, 4  ;;  %v307_v22 = vadd.f32 %v671_v7, %v306_v19 }
 0x1f2   :  { %v673_v28 = vpop.eup %672  ;;  %v460_v3 = vsel %vm396_vm0, %v459_v13, %v447_v20 }
 0x1f3   :  { %v312_v11 = vmul.f32 %v673_v28, %v848_v10  ;;  %v313_v31 = vmul.f32 %v673_v28, %v842_v49  ;;  %v314_v32 = vmul.f32 %v673_v28, %v844_v53  ;;  %v337_v33 = vadd.f32 %v336_v25, %v315_v17 }
 0x1f4   :  { %v343_v34 = vadd.f32 %v342_v26, %v316_v15  ;;  %v349_v35 = vadd.f32 %v348_v27, %v317_v18  ;;  %v308_v36 = vrot.slane %v307_v22, 2  ;;  %v300_v37 = vrot.slane %v673_v28, 4 }
 0x1f5   :  { %v318_v38 = vrot.slane %v312_v11, 4  ;;  %v324_v39 = vrot.slane %v313_v31, 4  ;;  %v330_v40 = vrot.slane %v314_v32, 4  ;;  %v338_v41 = vrot.slane %v337_v33, 2 }
 0x1f6   :  { %v344_v42 = vrot.slane %v343_v34, 2  ;;  %v350_v43 = vrot.slane %v349_v35, 2  ;;  %v309_v44 = vadd.f32 %v308_v36, %v307_v22  ;;  %v301_v45 = vadd.f32 %v673_v28, %v300_v37 }
 0x1f7   :  { %v319_v46 = vadd.f32 %v318_v38, %v312_v11  ;;  %v325_v10 = vadd.f32 %v324_v39, %v313_v31  ;;  %v331_v47 = vadd.f32 %v330_v40, %v314_v32  ;;  %v339_v49 = vadd.f32 %v338_v41, %v337_v33 }
 0x1f8   :  { %v345_v48 = vadd.f32 %v344_v42, %v343_v34  ;;  %v351_v53 = vadd.f32 %v350_v43, %v349_v35  ;;  %v310_v50 = vrot.slane %v309_v44, 1  ;;  %v302_v51 = vrot.slane %v301_v45, 2 }
 0x1f9   :  { %v320_v52 = vrot.slane %v319_v46, 2  ;;  %v326_v54 = vrot.slane %v325_v10, 2  ;;  %v332_v55 = vrot.slane %v331_v47, 2  ;;  %v340_v56 = vrot.slane %v339_v49, 1 }
 0x1fa   :  { %v346_v57 = vrot.slane %v345_v48, 1  ;;  %v352_v58 = vrot.slane %v351_v53, 1  ;;  %v311_v59 = vadd.f32 %v310_v50, %v309_v44  ;;  %v303_v60 = vadd.f32 %v302_v51, %v301_v45 }
 0x1fb   :  { %v321_v61 = vadd.f32 %v320_v52, %v319_v46  ;;  %v327_v62 = vadd.f32 %v326_v54, %v325_v10  ;;  %v333_v63 = vadd.f32 %v332_v55, %v331_v47  ;;  %v341_v0 = vadd.f32 %v340_v56, %v339_v49 }
 0x1fc   :  { %v347_v1 = vadd.f32 %v346_v57, %v345_v48  ;;  %v353_v2 = vadd.f32 %v352_v58, %v351_v53  ;;  %v304_v5 = vrot.slane %v303_v60, 1  ;;  %v462_v15 = vsel %vm396_vm0, %v461_v24, %v881_v8 }
 0x1fd   :  { %v322_v6 = vrot.slane %v321_v61, 1  ;;  %v328_v7 = vrot.slane %v327_v62, 1  ;;  %v334_v9 = vrot.slane %v333_v63, 1  ;;  %v386_v14 = vmul.f32 %v374_v29, %v341_v0 }
 0x1fe   :  { %v387_v16 = vmul.f32 %v378_v12, %v347_v1  ;;  %v388_v17 = vmul.f32 %v382_v30, %v353_v2  ;;  %v305_v18 = vadd.f32 %v304_v5, %v303_v60  ;;  %674 = vrcp.f32 %v311_v59 }
 0x1ff   :  { %v323_v19 = vadd.f32 %v322_v6, %v321_v61  ;;  %v329_v25 = vadd.f32 %v328_v7, %v327_v62  ;;  %v335_v26 = vadd.f32 %v334_v9, %v333_v63  ;;  %v395_v27 = vrot.slane %v386_v14, 7 }
 0x200   :  { %v398_v22 = vrot.slane %v387_v16, 7  ;;  %676 = vrcp.f32 %v305_v18  ;;  %v400_v11 = vrot.slane %v388_v17, 7  ;;  %v468_v31 = vsel %vm405_vm1, %v460_v3, 0.0 }
 0x201   :  { %v383_v20 = vmul.f32 %v374_v29, %v323_v19  ;;  %v384_v28 = vmul.f32 %v378_v12, %v329_v25  ;;  %v385_v13 = vmul.f32 %v382_v30, %v335_v26  ;;  %v469_v32 = vsel %vm405_vm1, %v462_v15, 0.0 }
 0x202   :  { %v464_v34 = vsel %vm396_vm0, %v463_v23, %v891_v21  ;;  %v470_v35 = vadd.f32 %v469_v32, %v468_v31  ;;  %v477_v43 = vstv %s933_s3 }
 0x203   :  { %v397_v33 = vsel %vm396_vm0, %v395_v27, %v383_v20  ;;  %v399_v8 = vsel %vm396_vm0, %v398_v22, %v384_v28  ;;  %v401_v24 = vsel %vm396_vm0, %v400_v11, %v385_v13  ;;  %v471_v37 = vsel %vm405_vm1, %v464_v34, 0.0 }
 0x204   :  { %v406_v29 = vsel %vm405_vm1, %v397_v33, 0.0  ;;  %v407_v12 = vsel %vm405_vm1, %v399_v8, 0.0  ;;  %v409_v36 = vsel %vm405_vm1, %v401_v24, 0.0  ;;  %v472_v40 = vadd.f32 %v471_v37, %v470_v35 }
 0x205   :  { %v408_v30 = vadd.f32 %v407_v12, %v406_v29 }
 0x207   :  { %v410_v38 = vadd.f32 %v409_v36, %v408_v30 }
 0x208   :  { %v675_v39 = vpop.eup %674 }
 0x209   :  { %411 = vadd.xlane.f32.xlu1 %v410_v38 }
 0x20a   :  { %v677_v41 = vpop.eup %676 }
 0x20b   :  { %v417_v42 = vsel %vm396_vm0, %v675_v39, %v677_v41 }
 0x20d   :  { %473 = vadd.xlane.f32.xlu1 %v472_v40 }
 0x296   :  { %v412_v21 = vpop.xlane.xlu1 %411 }
 0x297   :  { %v419_v23 = vmul.f32 %v417_v42, %v412_v21 }
 0x29a   :  { %v474_v44 = vpop.xlane.xlu1 %473 }
 0x29b   :  { %v475_v45 = vadd.f32 %v474_v44, %v419_v23 }
 0x29d   :  { %v478_v46 = vadd.f32 %v477_v43, %v475_v45 }
 0x29f   :  { %481 = vperm.xlu0 %665, %v478_v46  }
 0x31e   :  { %v482_v10 = vpop.permute.xlu0 %481 }
 0x31f   :  { %484 = vst [vmem:[#allocation9] sm:$0x3] %v482_v10 }
 0x320   :  { %755 = shalt.err (!%p752_p0)
}
 0x321   :  { %s756_s3 = scalar_lea.hbm %s934_s4, 32 }
 0x322   :  { %p757_p1 = scmp.ne.s32.totalorder %s934_s4, %s756_s3  ;;  %p760_p2 = scmp.lt.u32.totalorder %s756_s3, %s934_s4 }
 0x324   :  { %p762_p3 = pnand %p760_p2, %p757_p1 }
 0x326   :  { %765 = shalt.err (!%p762_p3)
}
 0x327   :  { %494 = dma.vmem_to_hbm [thread:$0]  %s492_s29, 32, %s934_s4, [#allocation5]  }
 0x328   :  { %770 = dma.done.wait [#allocation5], 32  }
 0x329   :  { %771 = vsyncadd [#allocation5], 4294967264 }
 0x32a   :  { %498 = vsyncpa [#allocation4], 1 }
 0x32b   :  { %499 = vsyncpa [#allocation7], 1 }
 0x32c   :  { %500 = vsyncpa [#allocation5], 1 }

</bundles_post_ra>
